<compile_context>
chip_gen: v5e
topology: v5e:2x2
jax: 0.10.0
libtpu: 0.0.40
codegen_flags: <defaults>
</compile_context>

<pallas_src>
import collections

import jax
import jax.numpy as jnp
from jax.experimental import pallas as pl
from jax.experimental.pallas import tpu as pltpu

_LANE = 128


def _tfa_predictions_kernel(loc_ref, locsq_ref, cen_ref, censq_ref, iw_ref,
                            w_ref, out_ref):
    # loc_ref: (3, Vt)   locsq_ref: (1, Vt)
    # cen_ref: (K, 3)    censq_ref: (K, 1)   iw_ref: (K, 1)
    # w_ref:   (T, K)    out_ref:   (T, Vt)
    # ||loc - c||^2 = ||c||^2 + ||loc||^2 - 2 c.loc  (cross term on the MXU)
    cross = jnp.dot(cen_ref[...], loc_ref[...],
                    preferred_element_type=jnp.float32)          # (K, Vt)
    delta2 = censq_ref[...] + locsq_ref[...] - 2.0 * cross        # (K, Vt)
    delta2 = jnp.maximum(delta2, 0.0)   # guard f32 cancellation going negative

    # radial basis: exp(-delta2 / width) with inv_width precomputed in wrapper
    factors = jnp.exp(-delta2 * iw_ref[...])                      # (K, Vt) EUP

    # predictions = weights @ factors  (MXU, f32 accumulation)
    out_ref[...] = jnp.dot(w_ref[...], factors,
                           preferred_element_type=jnp.float32
                           ).astype(out_ref.dtype)                # (T, Vt)


def tfa_predictions(locations, centers, log_widths, weights, *,
                    tile_v=2048, out_dtype=jnp.float32):
    """(weights @ radial_basis(locations, centers, log_widths)) -> (S,B,T,V)."""
    V = locations.shape[0]
    S, B, K, _ = centers.shape
    T = weights.shape[2]

    # lane-aligned voxel tile; pad V up to a multiple of the tile
    v_pad = ((V + _LANE - 1) // _LANE) * _LANE
    tile_v = max(_LANE, (min(tile_v, v_pad) // _LANE) * _LANE)
    v_pad = ((v_pad + tile_v - 1) // tile_v) * tile_v
    num_v_tiles = v_pad // tile_v

    loc_t = jnp.zeros((3, v_pad), jnp.float32)
    loc_t = loc_t.at[:, :V].set(jnp.asarray(locations, jnp.float32).T)   # (3,Vp)
    loc_sq = jnp.sum(loc_t * loc_t, axis=0, keepdims=True)               # (1,Vp)

    cen = jnp.asarray(centers, jnp.float32)                              # (S,B,K,3)
    cen_sq = jnp.sum(cen * cen, axis=-1, keepdims=True)                  # (S,B,K,1)
    inv_w = jnp.exp(-jnp.asarray(log_widths, jnp.float32))[..., None]    # (S,B,K,1)
    w = jnp.asarray(weights, jnp.float32)                                # (S,B,T,K)

    cost = pl.CostEstimate(
        flops=2 * S * B * T * K * v_pad          # weights @ factors
              + 2 * S * B * K * 3 * v_pad        # centers . locations
              + 4 * S * B * K * v_pad,           # elementwise
        transcendentals=S * B * K * v_pad,
        bytes_accessed=4 * (4 * v_pad + S * B * K * 5 + S * B * T * K
                            + S * B * T * v_pad),
    )

    out = pl.pallas_call(
        _tfa_predictions_kernel,
        out_shape=jax.ShapeDtypeStruct((S, B, T, v_pad), out_dtype),
        grid_spec=pltpu.PrefetchScalarGridSpec(
            num_scalar_prefetch=0,
            # V outermost: locations tile resident across all S*B iterations.
            grid=(num_v_tiles, S, B),
            in_specs=[
                pl.BlockSpec((3, tile_v), lambda v, s, b: (0, v)),
                pl.BlockSpec((1, tile_v), lambda v, s, b: (0, v)),
                pl.BlockSpec((None, None, K, 3), lambda v, s, b: (s, b, 0, 0)),
                pl.BlockSpec((None, None, K, 1), lambda v, s, b: (s, b, 0, 0)),
                pl.BlockSpec((None, None, K, 1), lambda v, s, b: (s, b, 0, 0)),
                pl.BlockSpec((None, None, T, K), lambda v, s, b: (s, b, 0, 0)),
            ],
            out_specs=pl.BlockSpec((None, None, T, tile_v),
                                   lambda v, s, b: (s, b, 0, v)),
        ),
        compiler_params=pltpu.CompilerParams(
            dimension_semantics=("parallel", "parallel", "parallel")),
        cost_estimate=cost,
    )(loc_t, loc_sq, cen, cen_sq, inv_w, w)

    return out[..., :V]


class TFAGenerativeLikelihood:
    """JAX/Pallas port of htfa_torch.tfa_models.TFAGenerativeLikelihood."""

    def __init__(self, locations, num_times, block=0, register_locations=True):
        self.voxel_locations = locations
        self._num_times = num_times
        self.block = block

    def forward(self, weights, centers, log_widths, params, times=None,
                observations=None, block_idx=None, locations=None,
                rng_key=None):
        if times is None:
            times = jnp.arange(self._num_times)
        if observations is None:
            observations = collections.defaultdict(lambda: None)
        if block_idx is None:
            # TODO(synk): PyTorch default builds block_idx from
            # torch.unique(return_inverse=True) (a tuple); we use the plain
            # block index, which matches the intended/explicit-caller path.
            block_idx = jnp.array([self.block], dtype=jnp.int32)
        if locations is None:
            locations = self.voxel_locations

        block_idx = jnp.atleast_1d(jnp.asarray(block_idx)).astype(jnp.int32)
        time_idx = jnp.arange(times.shape[0])

        # Pre-slice the block dimension so the kernel only computes (and writes
        # back) predictions for the blocks actually consumed below.
        cen_sel = jnp.take(jnp.asarray(centers), block_idx, axis=1)
        lw_sel = jnp.take(jnp.asarray(log_widths), block_idx, axis=1)
        w_sel = jnp.take(jnp.asarray(weights), block_idx, axis=1)

        # hot path: RBF factors + (weights @ factors) inside the Pallas kernel
        preds = tfa_predictions(locations, cen_sel, lw_sel, w_sel)  # (S,B',T,V)

        # reproduce torch advanced indexing [:, block_idx, time_idx]; after the
        # pre-slice the block coordinate is arange(B') broadcast against T.
        b_coord = jnp.arange(block_idx.shape[0])
        predictions = preds[:, b_coord, time_idx]                   # (S, T, V)

        sigma = jnp.exp(params['voxel_noise'][0])
        obs_y = observations['Y'] if 'Y' in observations else None
        if obs_y is not None:
            # trace.normal with value=observation returns the observation
            activations = obs_y
        else:
            # TODO(synk): probtorch trace log-prob recording has no Pallas
            # equivalent; we just draw the Normal sample.
            if rng_key is None:
                rng_key = jax.random.PRNGKey(0)
            eps = jax.random.normal(rng_key, predictions.shape,
                                    dtype=predictions.dtype)
            activations = predictions + sigma * eps
        return activations


def _radial_basis_ref(locations, centers, log_widths):
    loc = locations[None, None]                 # (1, 1, V, 3)
    cen = centers[:, :, :, None, :]             # (S, B, K, 1, 3)
    delta2 = ((loc - cen) ** 2).sum(-1)         # (S, B, K, V)
    # numerically-safe equivalent of exp(-exp(log(delta2) - log_widths))
    return jnp.exp(-delta2 * jnp.exp(-log_widths[..., None]))


if __name__ == "__main__":
    key = jax.random.PRNGKey(0)
    S, B, T, K, V = 2, 2, 8, 8, 300     # samples, blocks, times, factors, voxels
    k1, k2, k3, k4, k5 = jax.random.split(key, 5)

    locations = jax.random.uniform(k1, (V, 3), jnp.float32, -10.0, 10.0)
    centers = jax.random.uniform(k2, (S, B, K, 3), jnp.float32, -10.0, 10.0)
    log_widths = 0.5 * jax.random.normal(k3, (S, B, K), jnp.float32) + jnp.log(25.0)
    weights = jax.random.normal(k4, (S, B, T, K), jnp.float32)
    params = {'voxel_noise': jnp.array([-1.0], jnp.float32)}

    model = TFAGenerativeLikelihood(locations, num_times=T, block=0)
    activations = model.forward(weights, centers, log_widths, params,
                                rng_key=k5)
    activations = jax.block_until_ready(activations)
    assert activations.shape == (S, T, V), activations.shape

    # correctness check of the kernel hot path vs pure-JAX reference
    # (tile_v=128 exercises the multi-tile + V-padding path: 300 -> 3 x 128)
    preds_kernel = jax.block_until_ready(
        tfa_predictions(locations, centers, log_widths, weights, tile_v=128))
    factors_ref = _radial_basis_ref(locations, centers, log_widths)
    preds_ref = jnp.einsum('sbtk,sbkv->sbtv', weights, factors_ref,
                           precision=jax.lax.Precision.HIGHEST)
    assert preds_kernel.shape == (S, B, T, V), preds_kernel.shape
    assert jnp.allclose(preds_kernel, preds_ref, rtol=1e-3, atol=2e-3), \
        float(jnp.max(jnp.abs(preds_kernel - preds_ref)))

    print("KERNEL_OK")
</pallas_src>

<mosaic_0001>
module attributes {stable_mosaic.version = 11 : i64} {
  func.func @_tfa_predictions_kernel(%arg0: i32, %arg1: i32, %arg2: i32, %arg3: memref<3x384xf32, #tpu.memory_space<vmem>>, %arg4: memref<1x384xf32, #tpu.memory_space<vmem>>, %arg5: memref<1x1x8x3xf32, #tpu.memory_space<vmem>>, %arg6: memref<1x1x8x1xf32, #tpu.memory_space<vmem>>, %arg7: memref<1x1x8x1xf32, #tpu.memory_space<vmem>>, %arg8: memref<1x1x8x8xf32, #tpu.memory_space<vmem>>, %arg9: memref<1x1x8x384xf32, #tpu.memory_space<vmem>>) attributes {dimension_semantics = [#tpu.dimension_semantics<parallel>, #tpu.dimension_semantics<parallel>, #tpu.dimension_semantics<parallel>], iteration_bounds = array<i64: 1, 2, 1>, scalar_prefetch = 0 : i64, scratch_operands = 0 : i64, tpu.core_type = #tpu.core_type<tc>, window_params = [{transform_indices = @transform_0, window_bounds = array<i64: 3, 384>}, {transform_indices = @transform_1, window_bounds = array<i64: 1, 384>}, {transform_indices = @transform_2, window_bounds = array<i64: 1, 1, 8, 3>}, {transform_indices = @transform_3, window_bounds = array<i64: 1, 1, 8, 1>}, {transform_indices = @transform_4, window_bounds = array<i64: 1, 1, 8, 1>}, {transform_indices = @transform_5, window_bounds = array<i64: 1, 1, 8, 8>}, {transform_indices = @transform_6, window_bounds = array<i64: 1, 1, 8, 384>}]} {
    %c0 = arith.constant 0 : index
    %c0_0 = arith.constant 0 : index
    %c0_1 = arith.constant 0 : index
    %c0_2 = arith.constant 0 : index
    %0 = vector.load %arg5[%c0, %c0_0, %c0_1, %c0_2] : memref<1x1x8x3xf32, #tpu.memory_space<vmem>>, vector<1x1x8x3xf32>
    %1 = vector.shape_cast %0 : vector<1x1x8x3xf32> to vector<8x3xf32>
    %c0_3 = arith.constant 0 : index
    %c0_4 = arith.constant 0 : index
    %2 = vector.load %arg3[%c0_3, %c0_4] : memref<3x384xf32, #tpu.memory_space<vmem>>, vector<3x384xf32>
    %cst = arith.constant dense<0.000000e+00> : vector<8x384xf32>
    %3 = tpu.matmul %1, %2, %cst {dimension_numbers = #tpu.dot_dimension_numbers<[1], [0], [0], [1], [0, 0, 1, 1], [], []>} : vector<8x3xf32>, vector<3x384xf32>, vector<8x384xf32> -> vector<8x384xf32>
    %c0_5 = arith.constant 0 : index
    %c0_6 = arith.constant 0 : index
    %c0_7 = arith.constant 0 : index
    %c0_8 = arith.constant 0 : index
    %4 = vector.load %arg6[%c0_5, %c0_6, %c0_7, %c0_8] : memref<1x1x8x1xf32, #tpu.memory_space<vmem>>, vector<1x1x8x1xf32>
    %5 = vector.shape_cast %4 : vector<1x1x8x1xf32> to vector<8x1xf32>
    %c0_9 = arith.constant 0 : index
    %c0_10 = arith.constant 0 : index
    %6 = vector.load %arg4[%c0_9, %c0_10] : memref<1x384xf32, #tpu.memory_space<vmem>>, vector<1x384xf32>
    %7 = vector.broadcast %5 : vector<8x1xf32> to vector<8x384xf32>
    %8 = vector.broadcast %6 : vector<1x384xf32> to vector<8x384xf32>
    %9 = arith.addf %7, %8 : vector<8x384xf32>
    %cst_11 = arith.constant 2.000000e+00 : f32
    %10 = vector.broadcast %cst_11 : f32 to vector<8x384xf32>
    %11 = arith.mulf %10, %3 : vector<8x384xf32>
    %12 = arith.subf %9, %11 : vector<8x384xf32>
    %cst_12 = arith.constant 0.000000e+00 : f32
    %13 = vector.broadcast %cst_12 : f32 to vector<8x384xf32>
    %14 = arith.maximumf %12, %13 : vector<8x384xf32>
    %cst_13 = arith.constant 0.000000e+00 : f32
    %15 = vector.broadcast %cst_13 : f32 to vector<8x384xf32>
    %16 = arith.subf %15, %14 : vector<8x384xf32>
    %c0_14 = arith.constant 0 : index
    %c0_15 = arith.constant 0 : index
    %c0_16 = arith.constant 0 : index
    %c0_17 = arith.constant 0 : index
    %17 = vector.load %arg7[%c0_14, %c0_15, %c0_16, %c0_17] : memref<1x1x8x1xf32, #tpu.memory_space<vmem>>, vector<1x1x8x1xf32>
    %18 = vector.shape_cast %17 : vector<1x1x8x1xf32> to vector<8x1xf32>
    %19 = vector.broadcast %18 : vector<8x1xf32> to vector<8x384xf32>
    %20 = arith.mulf %16, %19 : vector<8x384xf32>
    %21 = math.exp %20 : vector<8x384xf32>
    %c0_18 = arith.constant 0 : index
    %c0_19 = arith.constant 0 : index
    %c0_20 = arith.constant 0 : index
    %c0_21 = arith.constant 0 : index
    %22 = vector.load %arg8[%c0_18, %c0_19, %c0_20, %c0_21] : memref<1x1x8x8xf32, #tpu.memory_space<vmem>>, vector<1x1x8x8xf32>
    %23 = vector.shape_cast %22 : vector<1x1x8x8xf32> to vector<8x8xf32>
    %cst_22 = arith.constant dense<0.000000e+00> : vector<8x384xf32>
    %24 = tpu.matmul %23, %21, %cst_22 {dimension_numbers = #tpu.dot_dimension_numbers<[1], [0], [0], [1], [0, 0, 1, 1], [], []>} : vector<8x8xf32>, vector<8x384xf32>, vector<8x384xf32> -> vector<8x384xf32>
    %c0_23 = arith.constant 0 : index
    %c0_24 = arith.constant 0 : index
    %c0_25 = arith.constant 0 : index
    %c0_26 = arith.constant 0 : index
    %25 = vector.load %arg9[%c0_23, %c0_24, %c0_25, %c0_26] : memref<1x1x8x384xf32, #tpu.memory_space<vmem>>, vector<1x1x8x384xf32>
    %26 = vector.shape_cast %25 : vector<1x1x8x384xf32> to vector<8x384xf32>
    %27 = vector.shape_cast %24 : vector<8x384xf32> to vector<1x1x8x384xf32>
    tpu.vector_store %arg9[%c0_23, %c0_24, %c0_25, %c0_26], %27 {strides = array<i32>} : memref<1x1x8x384xf32, #tpu.memory_space<vmem>>, vector<1x1x8x384xf32>,
    return
  }
  func.func @transform_0(%arg0: i32, %arg1: i32, %arg2: i32) -> (i32, i32) {
    %c0_i32 = arith.constant 0 : i32
    %c0_i32_0 = arith.constant 0 : i32
    return %c0_i32, %arg0 : i32, i32
  }
  func.func @transform_1(%arg0: i32, %arg1: i32, %arg2: i32) -> (i32, i32) {
    %c0_i32 = arith.constant 0 : i32
    %c0_i32_0 = arith.constant 0 : i32
    return %c0_i32, %arg0 : i32, i32
  }
  func.func @transform_2(%arg0: i32, %arg1: i32, %arg2: i32) -> (i32, i32, i32, i32) {
    %c0_i32 = arith.constant 0 : i32
    %c0_i32_0 = arith.constant 0 : i32
    %c0_i32_1 = arith.constant 0 : i32
    return %arg1, %arg2, %c0_i32, %c0_i32_0 : i32, i32, i32, i32
  }
  func.func @transform_3(%arg0: i32, %arg1: i32, %arg2: i32) -> (i32, i32, i32, i32) {
    %c0_i32 = arith.constant 0 : i32
    %c0_i32_0 = arith.constant 0 : i32
    %c0_i32_1 = arith.constant 0 : i32
    return %arg1, %arg2, %c0_i32, %c0_i32_0 : i32, i32, i32, i32
  }
  func.func @transform_4(%arg0: i32, %arg1: i32, %arg2: i32) -> (i32, i32, i32, i32) {
    %c0_i32 = arith.constant 0 : i32
    %c0_i32_0 = arith.constant 0 : i32
    %c0_i32_1 = arith.constant 0 : i32
    return %arg1, %arg2, %c0_i32, %c0_i32_0 : i32, i32, i32, i32
  }
  func.func @transform_5(%arg0: i32, %arg1: i32, %arg2: i32) -> (i32, i32, i32, i32) {
    %c0_i32 = arith.constant 0 : i32
    %c0_i32_0 = arith.constant 0 : i32
    %c0_i32_1 = arith.constant 0 : i32
    return %arg1, %arg2, %c0_i32, %c0_i32_0 : i32, i32, i32, i32
  }
  func.func @transform_6(%arg0: i32, %arg1: i32, %arg2: i32) -> (i32, i32, i32, i32) {
    %c0_i32 = arith.constant 0 : i32
    %c0_i32_0 = arith.constant 0 : i32
    return %arg1, %arg2, %c0_i32, %arg0 : i32, i32, i32, i32
  }
}

</mosaic_0001>

<bundles_post_ra>
// kernel: tpu_custom_call.1
= control target key start
LH: loop header
LB: loop body
LE: loop exit
PB: predicated region body
PF: predicated region fallthrough
CT: control target
= control target key end

     0   :  { %11 = vsyncpa [#allocation3], 0  ;;  %s1097_s0 = inlined_call_operand.vmem [shape: f32[3,384], index: 0, kind: input, shape index: {}]   ;;  %s1098_s1 = inlined_call_operand.vmem [shape: f32[1,384], index: 1, kind: input, shape index: {}]   ;;  %s1099_s2 = inlined_call_operand.vmem [shape: f32[2,1,8,3], index: 2, kind: input, shape index: {}]   ;;  %s1100_s3 = inlined_call_operand.vmem [shape: f32[2,1,8,1], index: 3, kind: input, shape index: {}]   ;;  %s1101_s4 = inlined_call_operand.vmem [shape: f32[2,1,8,1], index: 4, kind: input, shape index: {}]   ;;  %s1102_s5 = inlined_call_operand.vmem [shape: f32[2,1,8,8], index: 5, kind: input, shape index: {}]   ;;  %s1103_s6 = inlined_call_operand.hbm [shape: f32[2,1,8,384], index: 6, kind: output, shape index: {}]  }
   0x1   :  { %13 = vsyncpa [#allocation3 + $0x1], 0  ;;  %s976_s21 = smov 0   ;;  %s978_s22 = smov 0  }
   0x2   :  { %s980_s23 = smov 0   ;;  %s982_s24 = smov 0  }
   0x3   :  { %s984_s25 = smov 0   ;;  %s986_s26 = smov 0  }
   0x4 LB: > { %s772_s27 = sadd.s32 4294967295, %s938_s26   ;;  %s773_s28 = sadd.s32 4294967294, %s938_s26   ;;  %s938_s26 = sphi %s986_s26, %s19_s26   ;;  %s934_s25 = sphi %s984_s25, %s1110_s25   ;;  %s930_s24 = sphi %s982_s24, %s1109_s24   ;;  %s926_s23 = sphi %s980_s23, %s1108_s23   ;;  %s922_s22 = sphi %s978_s22, %s1107_s22   ;;  %s918_s21 = sphi %s976_s21, %s1106_s21  }
   0x5   : > { %s34_s29 = sadd.s32 1, %s934_s25  ;;  %s213_s30 = sadd.s32 1, %s926_s23 }
   0x6   : > { %p36_p0 = scmp.ge.s32.totalorder %s34_s29, 2  ;;  %p223_p1 = scmp.ne.s32.totalorder %s926_s23, %s922_s22 }
   0x7   : > { %p224_p2 = scmp.eq.s32.totalorder %s772_s27, 1  ;;  %p229_p3 = scmp.ne.s32.totalorder %s922_s22, %s918_s21 }
   0x8   : > { %s1112_s29 = smov (%p36_p0, %s34_s29), 0  ;;  %p230_p5 = scmp.eq.s32.totalorder %s773_s28, 1 }
   0x9   : > { %p1016_p4 = por %p224_p2, %p223_p1  ;;  %s206_s8 = ssub.s32 %s934_s25, %s1112_s29 }
   0xa   : > { %p778_p6 = scmp.ge.s32.totalorder %s938_s26, 1  ;;  %p211_p7 = scmp.eq.s32.totalorder %s206_s8, 0 }
   0xb   : > { %p1023_p8 = por %p230_p5, %p229_p3  ;;  %p305_p9 = scmp.lt.s32.totalorder %s938_s26, 3 }
   0xc   : > { %s1029_s10 = scalar_select %p211_p7, %s926_s23, %s213_s30  }
   0xd   : > { %p306_p10 = pnand %p778_p6, %p305_p9 }
   0xe   : > { %p378_p11 = scmp.lt.s32.totalorder (!%p306_p10), %s930_s24, 1  ;;  %s364_s18 = sand.u32 (!%p306_p10), 1, %s922_s22  }
   0xf   : > { %309 = sbr.rel (%p306_p10) target bundleno = 312 (0x138), region = 44  ;;  %s602_s12 = scalar_lea.sflag (!%p306_p10), [#allocation3], %s364_s18 }
  0x10   : > { %s796_s20 = smul.u32 (!%p306_p10), 24, %s930_s24 }
  0x14   : > { %v408_v0 = vld [vmem:[%s1097_s0] sm:$0x77]  ;;  %v409_v1 = vld [vmem:[%s1097_s0 + $0x8] sm:$0x7]  ;;  %s379_s15 = scalar_select %p378_p11, %s930_s24, 1  ;;  %v940_v2 = vmov 0  }
  0x15   : > { %412 = vst [vmem:[#allocation1] ss:$2 sm:$0xff] %v408_v0  ;;  %853 = vset.pattern.permute.xlu0 %v940_v2  ;;  %vm422_vm0 = vcmask 1042432   ;;  %vm418_vm1 = vcmask 23552   ;;  %v490_v9 = vld [vmem:[%s1098_s1] sm:$0x7] }
  0x16   : > { %414 = vst [vmem:[#allocation1 + $0x10] ss:$2 sm:$0xff] %v409_v1  ;;  %s1039_s16 = sshll.u32 %s379_s15, 3  ;;  %v497_v10 = vperm.slane %v490_v9, 0  ;;  %v498_v11 = vperm.slane %v490_v9, 1  ;;  %v499_v20 = vperm.slane %v490_v9, 2 }
  0x17   : > { %s384_s19 = scalar_lea.vmem %s1099_s2, %s1039_s16  ;;  %s391_s28 = scalar_lea.vmem %s1100_s3, %s1039_s16  ;;  %vm534_vm2 = vcmask 64512  }
  0x18   : > { %v489_v3 = vld [vmem:[%s391_s28] sm:$0xff]  ;;  %s398_s11 = scalar_lea.vmem %s1101_s4, %s1039_s16  ;;  %s405_s17 = scalar_lea.vmem %s1102_s5, %s1039_s16 }
  0x19   : > { %v407_v4 = vld [vmem:[%s384_s19] sm:$0xff]  ;;  %493 = vperm.xlu0 %853, %v489_v3   ;;  %s795_s19 = smul.u32 24, %s364_s18  ;;  %s617_s28 = scalar_lea.hbm %s1103_s6, %s796_s20 }
  0x1a   : > { %v518_v8 = vld [vmem:[%s398_s11] sm:$0xff]  ;;  %s621_s11 = sshll.u32 %s617_s28, 4  ;;  %s622_s11 = int_to_ptr.hbm [resolvable:$true] %s621_s11 }
  0x1b   : > { %v533_v39 = vld [vmem:[%s405_s17] sm:$0xff]  ;;  %s366_s30 = scalar_lea.vmem [#allocation2], %s795_s19  ;;  %s874_s13 = sshra.s32 %s622_s11, 4  ;;  %s875_s13 = int_to_ptr.hbm [resolvable:$true] %s874_s13 }
  0x1c   : > { %v415_v5 = vld.sshfl [vmem:[#allocation1] sm:$0xff pattern:$0x75316420]  ;;  %v416_v6 = vld.sshfl [vmem:[#allocation1 + $0x8] sm:$0xff pattern:$0x75316420]  ;;  %p881_p1 = scmp.lt.s32.totalorder %s875_s13, %s1103_s6 }
  0x1d   : > { %783 = vmatpush.msk.msra.mxu0 %vm422_vm0, %v415_v5  ;;  %785 = vmatpush.msk.msra.mxu1 %vm422_vm0, %v416_v6  ;;  %v417_v7 = vld.sshfl [vmem:[#allocation1 + $0x10] sm:$0xff pattern:$0x75316420]  ;;  %s619_s8 = sshll.u32 %s366_s30, 4  ;;  %s876_s24 = scalar_lea.hbm %s875_s13, 24  ;;  %s620_s8 = int_to_ptr.vmem [resolvable:$true] %s619_s8 }
  0x1e   : > { %787 = vmatpush.msk.msra.mxu2 %vm422_vm0, %v417_v7  ;;  %784 = vmatmul.msk.f32.vlgmr.msra.gmra.mxu0 %vm418_vm1, %v407_v4  ;;  %p877_p12 = scmp.ne.s32.totalorder %s875_s13, %s876_s24  ;;  %s880_s17 = scalar_lea.hbm %s1103_s6, 48 }
  0x1f   : > { %786 = vmatmul.msk.f32.vlgmr.msra.gmra.mxu1 %vm418_vm1, %v407_v4  ;;  %788 = vmatmul.msk.f32.vlgmr.msra.gmra.mxu2 %vm418_vm1, %v407_v4  ;;  %p882_p2 = scmp.lt.s32.totalorder %s880_s17, %s876_s24 }
  0x20   : > { %p878_p13 = pnand %p877_p12, %p1016_p4 }
  0x21   : > { %521 = vperm.xlu0 %853, %v518_v8   ;;  %p883_p3 = por %p882_p2, %p881_p1 }
  0x22   : > { %p879_p0 = pneg %p878_p13 }
  0x24   : > { %p884_p5 = pnand %p883_p3, %p879_p0 }
  0x8b   : > { %v494_v12 = vpop.permute.xlu0 %493 }
  0x8c   : > { %v503_v13 = vadd.f32 %v497_v10, %v494_v12  ;;  %v504_v14 = vadd.f32 %v498_v11, %v494_v12  ;;  %v505_v26 = vadd.f32 %v499_v20, %v494_v12 }
  0x93   : > { %v522_v28 = vpop.permute.xlu0 %521 }
  0x9b   : > { %v446_v15 = vpop.f32.mrf.mxu0 }
  0x9c   : > { %v506_v16 = vmul.f32 2.0, %v446_v15  ;;  %v466_v17 = vpop.f32.mrf.mxu1 }
  0x9d   : > { %v507_v18 = vmul.f32 2.0, %v466_v17 }
  0x9e   : > { %v509_v19 = vsub.f32 %v503_v13, %v506_v16 }
  0x9f   : > { %v510_v21 = vsub.f32 %v504_v14, %v507_v18 }
  0xa0   : > { %v512_v22 = vmax.f32 %v509_v19, 0.0 }
  0xa1   : > { %v513_v23 = vmax.f32 %v510_v21, 0.0 }
  0xa2   : > { %v515_v24 = vsub.f32 0.0, %v512_v22  ;;  %v486_v25 = vpop.f32.mrf.mxu2 }
  0xa3   : > { %v516_v27 = vsub.f32 0.0, %v513_v23  ;;  %v508_v29 = vmul.f32 2.0, %v486_v25 }
  0xa4   : > { %v524_v30 = vmul.f32 %v522_v28, %v515_v24 }
  0xa5   : > { %v525_v31 = vmul.f32 %v522_v28, %v516_v27  ;;  %v511_v32 = vsub.f32 %v505_v26, %v508_v29 }
  0xa6   : > { %v527_v33 = vmul.f32 1.442695, %v524_v30 }
  0xa7   : > { %v529_v34 = vmul.f32 1.442695, %v525_v31  ;;  %v514_v35 = vmax.f32 %v511_v32, 0.0 }
  0xa8   : > { %854 = vpow2.f32 %v527_v33 }
  0xa9   : > { %856 = vpow2.f32 %v529_v34  ;;  %v517_v36 = vsub.f32 0.0, %v514_v35 }
  0xab   : > { %v526_v37 = vmul.f32 %v522_v28, %v517_v36 }
  0xad   : > { %v531_v38 = vmul.f32 1.442695, %v526_v37 }
  0xae   : > { %v855_v40 = vpop.eup %854 }
  0xaf   : > { %v857_v41 = vpop.eup %856  ;;  %858 = vpow2.f32 %v531_v38  ;;  %553 = vmatpush.msra.mxu3 %v855_v40 }
  0xb0   : > { %573 = vmatpush.msrb.mxu0 %v857_v41  ;;  %789 = vmatmul.msk.f32.vlgmr.msra.gmra.mxu3 %vm534_vm2, %v533_v39 }
  0xb1   : > { %790 = vmatmul.msk.f32.vlgmr.msrb.gmra.mxu0 %vm534_vm2, %v533_v39 }
  0xb5   : > { %v859_v42 = vpop.eup %858 }
  0xb6   : > { %593 = vmatpush.msrb.mxu1 %v859_v42 }
  0xb7   : > { %791 = vmatmul.msk.f32.vlgmr.msrb.gmra.mxu1 %vm534_vm2, %v533_v39 }
 0x12e   : > { %v575_v43 = vpop.f32.mrf.mxu0 }
 0x12f   : > { %599 = vst [vmem:[%s366_s30 + $0x8] sm:$0xff] %v575_v43 }
 0x133   : > { %v555_v44 = vpop.f32.mrf.mxu3 }
 0x134   : > { %598 = vst [vmem:[%s366_s30] sm:$0xff] %v555_v44  ;;  %v595_v45 = vpop.f32.mrf.mxu1 }
 0x135   : > { %600 = vst [vmem:[%s366_s30 + $0x10] sm:$0xff] %v595_v45 }
 0x136   : > { %887 = shalt.err (!%p884_p5)
}
 0x137   : > { %797 = dma.vmem_to_hbm [thread:$0]  (%p1016_p4), %s620_s8, 384, %s622_s11, %s602_s12  }
 0x138 PF: > { %p803_p6 = scmp.ge.s32.totalorder %s938_s26, 2  ;;  %s633_s18 = sand.u32 1, %s918_s21  }
 0x139   : > { %s634_s27 = scalar_lea.sflag [#allocation3], %s633_s18 }
 0x13a   : > { %p800_p7 = pnand %p803_p6, %p1023_p8 }
 0x13c   : > { %p801_p9 = pneg %p800_p7 }
 0x13e   : > { %913 = dma.done.wait (%p801_p9), %s634_s27, 384  }
 0x13f   : > { %915 = vsyncadd (%p801_p9), %s634_s27, 4294966912  ;;  %s19_s26 = sadd.s32 1, %s938_s26   ;;  %s1106_s21 = smov %s922_s22 }
 0x140   : > { %p16_p10 = scmp.ge.s32.totalorder %s19_s26, 4   ;;  %s1107_s22 = smov %s926_s23 }
 0x141   : > { %s1108_s23 = smov %s1029_s10  ;;  %s1109_s24 = smov %s934_s25 }
 0x142   : > { %s1110_s25 = smov %s1112_s29  ;;  %18 = sbr.rel (!%p16_p10) target bundleno = 4 (0x4), region = 95 }
 0x147   :  { %640 = vsyncpa [#allocation3], 1 }
 0x148   :  { %642 = vsyncpa [#allocation3 + $0x1], 1 }

</bundles_post_ra>
